<compile_context>
chip_gen: v6e
topology: v6e:2x2x1
jax: 0.10.0
libtpu: 0.0.40
codegen_flags: <defaults>
</compile_context>

<pallas_src>
import functools

import jax
import jax.numpy as jnp
from jax.experimental import pallas as pl
from jax.experimental.pallas import tpu as pltpu


def _round_up(x, m):
    return ((x + m - 1) // m) * m


def _cdiv(a, b):
    return -(-a // b)


def _device_kind():
    try:
        return jax.devices()[0].device_kind.lower()
    except Exception:
        return ""


_DEVICE_KIND = _device_kind()
# v7x exposes 2 TensorCores per chip; "parallel" grid axes shard across them.
_NUM_TC = 2 if "v7" in _DEVICE_KIND else 1
# v5 MXU is 128-deep: the stacked-skip (K=256/384) fold only pays on v6e/v7x.
_DEFAULT_STACK = "v5" not in _DEVICE_KIND


# ----------------------------------------------------------------------------
# Kernels
# ----------------------------------------------------------------------------
def _mlp_decoder_stacked_kernel(
    x_ref,                       # (tm, hdim) f32
    w1_ref, b1_ref,              # (hdim, 128) mm_dtype, (1, 128) f32
    w2_ref, b2_ref,              # (128, 128)  mm_dtype  ((1+s12) pre-folded)
    w3s_ref, b3_ref,             # (256, 128)  mm_dtype  (skip fold stacked on K)
    w4s_ref, b4_ref,             # (384, 128)  mm_dtype  (skip fold stacked on K)
    wf_ref, bf_ref,              # (128, nclass) mm_dtype, (1, nclass) f32
    o_ref,                       # (tm, nclass) f32
):
    mm = w1_ref.dtype

    x = x_ref[...].astype(mm)
    # h1 = relu(x @ W1 + b1)            (cast to mm once; only mm copy stays live)
    h1 = jnp.maximum(
        jnp.dot(x, w1_ref[...], preferred_element_type=jnp.float32)
        + b1_ref[...], 0.0).astype(mm)
    # h2 = relu(h1 @ ((1+s12)*W2) + b2)
    h2 = jnp.maximum(
        jnp.dot(h1, w2_ref[...], preferred_element_type=jnp.float32)
        + b2_ref[...], 0.0).astype(mm)
    # h3 = relu([h1 | h2] @ [s13*W3 ; (1+s23)*W3] + b3)   -- skip combine on MXU
    h12 = jnp.concatenate([h1, h2], axis=-1)
    h3 = jnp.maximum(
        jnp.dot(h12, w3s_ref[...], preferred_element_type=jnp.float32)
        + b3_ref[...], 0.0).astype(mm)
    # h4 = relu([h1 | h2 | h3] @ [s14*W4 ; s24*W4 ; (1+s34)*W4] + b4)
    h123 = jnp.concatenate([h12, h3], axis=-1)
    h4 = jnp.maximum(
        jnp.dot(h123, w4s_ref[...], preferred_element_type=jnp.float32)
        + b4_ref[...], 0.0).astype(mm)
    # output = sigmoid(h4 @ Wf + bf)    (emitted at nclass lanes directly)
    logits = (jnp.dot(h4, wf_ref[...], preferred_element_type=jnp.float32)
              + bf_ref[...])
    o_ref[...] = jax.nn.sigmoid(logits).astype(o_ref.dtype)


def _mlp_decoder_scalar_kernel(
    skip_ref,                    # SMEM (5,) combined skip coefficients
    x_ref,
    w1_ref, b1_ref,
    w2_ref, b2_ref,              # (1+s12) pre-folded into W2
    w3_ref, b3_ref,
    w4_ref, b4_ref,
    wf_ref, bf_ref,
    o_ref,
):
    c23 = skip_ref[0]            # 1 + skip_weight_2_to_3
    s13 = skip_ref[1]            #     skip_weight_1_to_3
    c34 = skip_ref[2]            # 1 + skip_weight_3_to_4
    s24 = skip_ref[3]            #     skip_weight_2_to_4
    s14 = skip_ref[4]            #     skip_weight_1_to_4
    mm = w1_ref.dtype

    x = x_ref[...].astype(mm)
    h1 = jnp.maximum(
        jnp.dot(x, w1_ref[...], preferred_element_type=jnp.float32)
        + b1_ref[...], 0.0)
    h2 = jnp.maximum(
        jnp.dot(h1.astype(mm), w2_ref[...], preferred_element_type=jnp.float32)
        + b2_ref[...], 0.0)
    h3_in = (c23 * h2 + s13 * h1).astype(mm)          # f32 VALU combine (v5e-safe)
    h3 = jnp.maximum(
        jnp.dot(h3_in, w3_ref[...], preferred_element_type=jnp.float32)
        + b3_ref[...], 0.0)
    h4_in = (c34 * h3 + s24 * h2 + s14 * h1).astype(mm)
    h4 = jnp.maximum(
        jnp.dot(h4_in, w4_ref[...], preferred_element_type=jnp.float32)
        + b4_ref[...], 0.0).astype(mm)
    logits = (jnp.dot(h4, wf_ref[...], preferred_element_type=jnp.float32)
              + bf_ref[...])
    o_ref[...] = jax.nn.sigmoid(logits).astype(o_ref.dtype)


# ----------------------------------------------------------------------------
# One-time parameter preparation (hoisted out of the per-call hot path)
# ----------------------------------------------------------------------------
def prepare_params(params, compute_dtype=jnp.bfloat16, stack_skips=None):
    """Fold skip algebra into weights, cast MXU operands, keep biases f32.

    Returns (prepped_dict, stacked_flag).  Call once; reuse for every forward.
    """
    if stack_skips is None:
        stack_skips = _DEFAULT_STACK
    s = params["skip"]           # (s12, s13, s14, s23, s24, s34)
    s12, s13, s14, s23, s24, s34 = (s[i] for i in range(6))
    cd = compute_dtype

    prepped = {
        "w1": params["w1"].astype(cd),
        "b1": params["b1"].astype(jnp.float32),
        "w2": ((1.0 + s12) * params["w2"]).astype(cd),
        "b2": params["b2"].astype(jnp.float32),
        "b3": params["b3"].astype(jnp.float32),
        "b4": params["b4"].astype(jnp.float32),
        "wf": params["wf"].astype(cd),
        "bf": params["bf"].astype(jnp.float32),
    }
    if stack_skips:
        # (s13*h1 + (1+s23)*h2) @ W3 == [h1|h2] @ [s13*W3 ; (1+s23)*W3]
        prepped["w3"] = jnp.concatenate(
            [s13 * params["w3"], (1.0 + s23) * params["w3"]], axis=0).astype(cd)
        prepped["w4"] = jnp.concatenate(
            [s14 * params["w4"], s24 * params["w4"], (1.0 + s34) * params["w4"]],
            axis=0).astype(cd)
    else:
        prepped["w3"] = params["w3"].astype(cd)
        prepped["w4"] = params["w4"].astype(cd)
        prepped["skip"] = jnp.stack(
            [1.0 + s23, s13, 1.0 + s34, s24, s14]).astype(jnp.float32)

    # Materialize now so the forward pass does no parameter prep work.
    prepped = jax.tree_util.tree_map(jax.block_until_ready, prepped)
    return prepped, bool(stack_skips)


# ----------------------------------------------------------------------------
# Forward
# ----------------------------------------------------------------------------
def _choose_tiling(n):
    """Pick (rows_per_step, grid_steps): big MXU-friendly tiles, and on v7x
    keep the step count a multiple of 2 so both TensorCores get work."""
    n8 = _round_up(max(n, 1), 8)
    tm_cap = 512                                   # sweepable; VMEM is a non-issue
    g = _cdiv(n8, tm_cap)
    if _NUM_TC > 1 and n8 >= 8 * _NUM_TC:
        g = _round_up(max(g, _NUM_TC), _NUM_TC)
    tm = _round_up(_cdiv(n8, g), 8)
    g = _cdiv(n8, tm)
    if _NUM_TC > 1 and g > 1:
        g = _round_up(g, _NUM_TC)
    return tm, g


@functools.partial(jax.jit, static_argnames=("stacked",))
def disease_mlp_forward(disease_emb, prepped, stacked=True):
    """disease_emb: (N, disease_dim) f32; prepped from prepare_params()."""
    n, hdim = disease_emb.shape
    nclass = prepped["wf"].shape[1]

    tm, g = _choose_tiling(n)
    n_pad = tm * g

    x = disease_emb
    if n_pad != n:
        x = jnp.pad(x, ((0, n_pad - n), (0, 0)))

    def full_spec(shape):
        return pl.BlockSpec(shape, lambda i: (0,) * len(shape),
                            memory_space=pltpu.MemorySpace.VMEM)

    x_spec = pl.BlockSpec((tm, hdim), lambda i: (i, 0),
                          memory_space=pltpu.MemorySpace.VMEM)
    out_spec = pl.BlockSpec((tm, nclass), lambda i: (i, 0),
                            memory_space=pltpu.MemorySpace.VMEM)
    weight_specs = [
        full_spec(prepped["w1"].shape), full_spec(prepped["b1"].shape),
        full_spec(prepped["w2"].shape), full_spec(prepped["b2"].shape),
        full_spec(prepped["w3"].shape), full_spec(prepped["b3"].shape),
        full_spec(prepped["w4"].shape), full_spec(prepped["b4"].shape),
        full_spec(prepped["wf"].shape), full_spec(prepped["bf"].shape),
    ]
    weight_args = (
        prepped["w1"], prepped["b1"], prepped["w2"], prepped["b2"],
        prepped["w3"], prepped["b3"], prepped["w4"], prepped["b4"],
        prepped["wf"], prepped["bf"],
    )

    if stacked:
        kernel = _mlp_decoder_stacked_kernel
        in_specs = [x_spec] + weight_specs
        args = (x,) + weight_args
    else:
        kernel = _mlp_decoder_scalar_kernel
        in_specs = ([pl.BlockSpec(memory_space=pltpu.MemorySpace.SMEM), x_spec]
                    + weight_specs)
        args = (prepped["skip"], x) + weight_args

    out = pl.pallas_call(
        kernel,
        out_shape=jax.ShapeDtypeStruct((n_pad, nclass), jnp.float32),
        grid=(g,),
        in_specs=in_specs,
        out_specs=out_spec,
        compiler_params=pltpu.CompilerParams(
            dimension_semantics=("parallel",)),
    )(*args)

    return out if n_pad == n else out[:n]


# ----------------------------------------------------------------------------
# Reference + synthetic params
# ----------------------------------------------------------------------------
def init_params(key, disease_dim, n_class):
    """PyTorch nn.Linear stores W as (out, in); here pre-transposed to (in, out)."""
    keys = jax.random.split(key, 11)

    def linear(kw, kb, fan_in, fan_out):
        bound = 1.0 / jnp.sqrt(float(fan_in))
        w = jax.random.uniform(kw, (fan_in, fan_out), jnp.float32, -bound, bound)
        b = jax.random.uniform(kb, (1, fan_out), jnp.float32, -bound, bound)
        return w, b

    w1, b1 = linear(keys[0], keys[1], disease_dim, 128)
    w2, b2 = linear(keys[2], keys[3], 128, 128)
    w3, b3 = linear(keys[4], keys[5], 128, 128)
    w4, b4 = linear(keys[6], keys[7], 128, 128)
    wf, bf = linear(keys[8], keys[9], 128, n_class)
    # six scalar skip weights ~ torch.rand(1): (s12, s13, s14, s23, s24, s34)
    skip = jax.random.uniform(keys[10], (6,), jnp.float32, 0.0, 1.0)
    return dict(w1=w1, b1=b1, w2=w2, b2=b2, w3=w3, b3=b3, w4=w4, b4=b4,
                wf=wf, bf=bf, skip=skip)


def reference_forward(x, p):
    """Pure-JAX reference of the PyTorch forward for validation."""
    s12, s13, s14, s23, s24, s34 = [p["skip"][i] for i in range(6)]
    relu = lambda v: jnp.maximum(v, 0.0)
    h1 = relu(x @ p["w1"] + p["b1"])
    h2 = relu((h1 + s12 * h1) @ p["w2"] + p["b2"])
    h3 = relu((h2 + s23 * h2 + s13 * h1) @ p["w3"] + p["b3"])
    h4 = relu((h3 + s34 * h3 + s24 * h2 + s14 * h1) @ p["w4"] + p["b4"])
    return jax.nn.sigmoid(h4 @ p["wf"] + p["bf"])


if __name__ == "__main__":
    key = jax.random.PRNGKey(0)
    k_params, k_x, k_x2 = jax.random.split(key, 3)

    batch, disease_dim, n_class = 16, 32, 8
    params = init_params(k_params, disease_dim, n_class)
    disease_emb = jax.random.normal(k_x, (batch, disease_dim), jnp.float32)
    ref = reference_forward(disease_emb, params)

    # f32 MXU path (stacked skip fold on v6e/v7x, scalar combine on v5e).
    p_f32, stacked = prepare_params(params, compute_dtype=jnp.float32)
    out_f32 = jax.block_until_ready(
        disease_mlp_forward(disease_emb, p_f32, stacked=stacked))
    assert out_f32.shape == (batch, n_class)
    assert jnp.allclose(out_f32, ref, atol=1e-4, rtol=1e-4), "f32 mismatch vs reference"

    # Default bf16 MXU path (f32 accumulation).
    p_bf16, stacked_bf = prepare_params(params)
    out_bf16 = jax.block_until_ready(
        disease_mlp_forward(disease_emb, p_bf16, stacked=stacked_bf))
    assert out_bf16.shape == (batch, n_class)
    assert jnp.allclose(out_bf16, ref, atol=5e-2), "bf16 mismatch vs reference"

    # Explicit scalar-combine (v5e-style) variant.
    p_sc, _ = prepare_params(params, compute_dtype=jnp.float32, stack_skips=False)
    out_sc = jax.block_until_ready(
        disease_mlp_forward(disease_emb, p_sc, stacked=False))
    assert jnp.allclose(out_sc, ref, atol=1e-4, rtol=1e-4), "scalar-skip mismatch"

    # Larger, non-multiple-of-tile batch: multi-step grid + row padding/slice.
    big = 300
    x_big = jax.random.normal(k_x2, (big, disease_dim), jnp.float32)
    out_big = jax.block_until_ready(
        disease_mlp_forward(x_big, p_f32, stacked=stacked))
    assert out_big.shape == (big, n_class)
    assert jnp.allclose(out_big, reference_forward(x_big, params),
                        atol=1e-4, rtol=1e-4), "multi-tile mismatch vs reference"

    print("KERNEL_OK")
</pallas_src>

<mosaic_0001>
module attributes {stable_mosaic.version = 11 : i64} {
  func.func @_mlp_decoder_stacked_kernel(%arg0: i32, %arg1: memref<16x32xf32, #tpu.memory_space<vmem>>, %arg2: memref<32x128xf32, #tpu.memory_space<vmem>>, %arg3: memref<1x128xf32, #tpu.memory_space<vmem>>, %arg4: memref<128x128xf32, #tpu.memory_space<vmem>>, %arg5: memref<1x128xf32, #tpu.memory_space<vmem>>, %arg6: memref<256x128xf32, #tpu.memory_space<vmem>>, %arg7: memref<1x128xf32, #tpu.memory_space<vmem>>, %arg8: memref<384x128xf32, #tpu.memory_space<vmem>>, %arg9: memref<1x128xf32, #tpu.memory_space<vmem>>, %arg10: memref<128x8xf32, #tpu.memory_space<vmem>>, %arg11: memref<1x8xf32, #tpu.memory_space<vmem>>, %arg12: memref<16x8xf32, #tpu.memory_space<vmem>>) attributes {dimension_semantics = [#tpu.dimension_semantics<parallel>], iteration_bounds = array<i64: 1>, scalar_prefetch = 0 : i64, scratch_operands = 0 : i64, tpu.core_type = #tpu.core_type<tc>, window_params = [{transform_indices = @transform_0, window_bounds = array<i64: 16, 32>}, {pipeline_mode = #tpu.pipeline_mode<synchronous>, transform_indices = @transform_1, window_bounds = array<i64: 32, 128>}, {pipeline_mode = #tpu.pipeline_mode<synchronous>, transform_indices = @transform_2, window_bounds = array<i64: 1, 128>}, {pipeline_mode = #tpu.pipeline_mode<synchronous>, transform_indices = @transform_3, window_bounds = array<i64: 128, 128>}, {pipeline_mode = #tpu.pipeline_mode<synchronous>, transform_indices = @transform_4, window_bounds = array<i64: 1, 128>}, {pipeline_mode = #tpu.pipeline_mode<synchronous>, transform_indices = @transform_5, window_bounds = array<i64: 256, 128>}, {pipeline_mode = #tpu.pipeline_mode<synchronous>, transform_indices = @transform_6, window_bounds = array<i64: 1, 128>}, {pipeline_mode = #tpu.pipeline_mode<synchronous>, transform_indices = @transform_7, window_bounds = array<i64: 384, 128>}, {pipeline_mode = #tpu.pipeline_mode<synchronous>, transform_indices = @transform_8, window_bounds = array<i64: 1, 128>}, {pipeline_mode = #tpu.pipeline_mode<synchronous>, transform_indices = @transform_9, window_bounds = array<i64: 128, 8>}, {pipeline_mode = #tpu.pipeline_mode<synchronous>, transform_indices = @transform_10, window_bounds = array<i64: 1, 8>}, {transform_indices = @transform_11, window_bounds = array<i64: 16, 8>}]} {
    %c0 = arith.constant 0 : index
    %c0_0 = arith.constant 0 : index
    %0 = vector.load %arg1[%c0, %c0_0] : memref<16x32xf32, #tpu.memory_space<vmem>>, vector<16x32xf32>
    %c0_1 = arith.constant 0 : index
    %c0_2 = arith.constant 0 : index
    %1 = vector.load %arg2[%c0_1, %c0_2] : memref<32x128xf32, #tpu.memory_space<vmem>>, vector<32x128xf32>
    %cst = arith.constant dense<0.000000e+00> : vector<16x128xf32>
    %2 = tpu.matmul %0, %1, %cst {dimension_numbers = #tpu.dot_dimension_numbers<[1], [0], [0], [1], [0, 0, 1, 1], [], []>} : vector<16x32xf32>, vector<32x128xf32>, vector<16x128xf32> -> vector<16x128xf32>
    %c0_3 = arith.constant 0 : index
    %c0_4 = arith.constant 0 : index
    %3 = vector.load %arg3[%c0_3, %c0_4] : memref<1x128xf32, #tpu.memory_space<vmem>>, vector<1x128xf32>
    %4 = vector.broadcast %3 : vector<1x128xf32> to vector<16x128xf32>
    %5 = arith.addf %2, %4 : vector<16x128xf32>
    %cst_5 = arith.constant 0.000000e+00 : f32
    %6 = vector.broadcast %cst_5 : f32 to vector<16x128xf32>
    %7 = arith.maximumf %5, %6 : vector<16x128xf32>
    %c0_6 = arith.constant 0 : index
    %c0_7 = arith.constant 0 : index
    %8 = vector.load %arg4[%c0_6, %c0_7] : memref<128x128xf32, #tpu.memory_space<vmem>>, vector<128x128xf32>
    %cst_8 = arith.constant dense<0.000000e+00> : vector<16x128xf32>
    %9 = tpu.matmul %7, %8, %cst_8 {dimension_numbers = #tpu.dot_dimension_numbers<[1], [0], [0], [1], [0, 0, 1, 1], [], []>} : vector<16x128xf32>, vector<128x128xf32>, vector<16x128xf32> -> vector<16x128xf32>
    %c0_9 = arith.constant 0 : index
    %c0_10 = arith.constant 0 : index
    %10 = vector.load %arg5[%c0_9, %c0_10] : memref<1x128xf32, #tpu.memory_space<vmem>>, vector<1x128xf32>
    %11 = vector.broadcast %10 : vector<1x128xf32> to vector<16x128xf32>
    %12 = arith.addf %9, %11 : vector<16x128xf32>
    %cst_11 = arith.constant 0.000000e+00 : f32
    %13 = vector.broadcast %cst_11 : f32 to vector<16x128xf32>
    %14 = arith.maximumf %12, %13 : vector<16x128xf32>
    %15 = tpu.concatenate %7, %14 in 1 : vector<16x128xf32>, vector<16x128xf32> -> vector<16x256xf32>
    %c0_12 = arith.constant 0 : index
    %c0_13 = arith.constant 0 : index
    %16 = vector.load %arg6[%c0_12, %c0_13] : memref<256x128xf32, #tpu.memory_space<vmem>>, vector<256x128xf32>
    %cst_14 = arith.constant dense<0.000000e+00> : vector<16x128xf32>
    %17 = tpu.matmul %15, %16, %cst_14 {dimension_numbers = #tpu.dot_dimension_numbers<[1], [0], [0], [1], [0, 0, 1, 1], [], []>} : vector<16x256xf32>, vector<256x128xf32>, vector<16x128xf32> -> vector<16x128xf32>
    %c0_15 = arith.constant 0 : index
    %c0_16 = arith.constant 0 : index
    %18 = vector.load %arg7[%c0_15, %c0_16] : memref<1x128xf32, #tpu.memory_space<vmem>>, vector<1x128xf32>
    %19 = vector.broadcast %18 : vector<1x128xf32> to vector<16x128xf32>
    %20 = arith.addf %17, %19 : vector<16x128xf32>
    %cst_17 = arith.constant 0.000000e+00 : f32
    %21 = vector.broadcast %cst_17 : f32 to vector<16x128xf32>
    %22 = arith.maximumf %20, %21 : vector<16x128xf32>
    %23 = tpu.concatenate %15, %22 in 1 : vector<16x256xf32>, vector<16x128xf32> -> vector<16x384xf32>
    %c0_18 = arith.constant 0 : index
    %c0_19 = arith.constant 0 : index
    %24 = vector.load %arg8[%c0_18, %c0_19] : memref<384x128xf32, #tpu.memory_space<vmem>>, vector<384x128xf32>
    %cst_20 = arith.constant dense<0.000000e+00> : vector<16x128xf32>
    %25 = tpu.matmul %23, %24, %cst_20 {dimension_numbers = #tpu.dot_dimension_numbers<[1], [0], [0], [1], [0, 0, 1, 1], [], []>} : vector<16x384xf32>, vector<384x128xf32>, vector<16x128xf32> -> vector<16x128xf32>
    %c0_21 = arith.constant 0 : index
    %c0_22 = arith.constant 0 : index
    %26 = vector.load %arg9[%c0_21, %c0_22] : memref<1x128xf32, #tpu.memory_space<vmem>>, vector<1x128xf32>
    %27 = vector.broadcast %26 : vector<1x128xf32> to vector<16x128xf32>
    %28 = arith.addf %25, %27 : vector<16x128xf32>
    %cst_23 = arith.constant 0.000000e+00 : f32
    %29 = vector.broadcast %cst_23 : f32 to vector<16x128xf32>
    %30 = arith.maximumf %28, %29 : vector<16x128xf32>
    %c0_24 = arith.constant 0 : index
    %c0_25 = arith.constant 0 : index
    %31 = vector.load %arg10[%c0_24, %c0_25] : memref<128x8xf32, #tpu.memory_space<vmem>>, vector<128x8xf32>
    %cst_26 = arith.constant dense<0.000000e+00> : vector<16x8xf32>
    %32 = tpu.matmul %30, %31, %cst_26 {dimension_numbers = #tpu.dot_dimension_numbers<[1], [0], [0], [1], [0, 0, 1, 1], [], []>} : vector<16x128xf32>, vector<128x8xf32>, vector<16x8xf32> -> vector<16x8xf32>
    %c0_27 = arith.constant 0 : index
    %c0_28 = arith.constant 0 : index
    %33 = vector.load %arg11[%c0_27, %c0_28] : memref<1x8xf32, #tpu.memory_space<vmem>>, vector<1x8xf32>
    %34 = vector.broadcast %33 : vector<1x8xf32> to vector<16x8xf32>
    %35 = arith.addf %32, %34 : vector<16x8xf32>
    %36 = arith.negf %35 : vector<16x8xf32>
    %37 = math.exp %36 : vector<16x8xf32>
    %cst_29 = arith.constant 1.000000e+00 : f32
    %38 = vector.broadcast %cst_29 : f32 to vector<16x8xf32>
    %39 = arith.addf %38, %37 : vector<16x8xf32>
    %40 = arith.divf %38, %39 : vector<16x8xf32>
    %c0_30 = arith.constant 0 : index
    %c0_31 = arith.constant 0 : index
    %41 = vector.load %arg12[%c0_30, %c0_31] : memref<16x8xf32, #tpu.memory_space<vmem>>, vector<16x8xf32>
    tpu.vector_store %arg12[%c0_30, %c0_31], %40 {strides = array<i32>} : memref<16x8xf32, #tpu.memory_space<vmem>>, vector<16x8xf32>,
    return
  }
  func.func @transform_0(%arg0: i32) -> (i32, i32) {
    %c0_i32 = arith.constant 0 : i32
    %c0_i32_0 = arith.constant 0 : i32
    return %arg0, %c0_i32 : i32, i32
  }
  func.func @transform_1(%arg0: i32) -> (i32, i32) {
    %c0_i32 = arith.constant 0 : i32
    %c0_i32_0 = arith.constant 0 : i32
    %c0_i32_1 = arith.constant 0 : i32
    return %c0_i32, %c0_i32_0 : i32, i32
  }
  func.func @transform_2(%arg0: i32) -> (i32, i32) {
    %c0_i32 = arith.constant 0 : i32
    %c0_i32_0 = arith.constant 0 : i32
    %c0_i32_1 = arith.constant 0 : i32
    return %c0_i32, %c0_i32_0 : i32, i32
  }
  func.func @transform_3(%arg0: i32) -> (i32, i32) {
    %c0_i32 = arith.constant 0 : i32
    %c0_i32_0 = arith.constant 0 : i32
    %c0_i32_1 = arith.constant 0 : i32
    return %c0_i32, %c0_i32_0 : i32, i32
  }
  func.func @transform_4(%arg0: i32) -> (i32, i32) {
    %c0_i32 = arith.constant 0 : i32
    %c0_i32_0 = arith.constant 0 : i32
    %c0_i32_1 = arith.constant 0 : i32
    return %c0_i32, %c0_i32_0 : i32, i32
  }
  func.func @transform_5(%arg0: i32) -> (i32, i32) {
    %c0_i32 = arith.constant 0 : i32
    %c0_i32_0 = arith.constant 0 : i32
    %c0_i32_1 = arith.constant 0 : i32
    return %c0_i32, %c0_i32_0 : i32, i32
  }
  func.func @transform_6(%arg0: i32) -> (i32, i32) {
    %c0_i32 = arith.constant 0 : i32
    %c0_i32_0 = arith.constant 0 : i32
    %c0_i32_1 = arith.constant 0 : i32
    return %c0_i32, %c0_i32_0 : i32, i32
  }
  func.func @transform_7(%arg0: i32) -> (i32, i32) {
    %c0_i32 = arith.constant 0 : i32
    %c0_i32_0 = arith.constant 0 : i32
    %c0_i32_1 = arith.constant 0 : i32
    return %c0_i32, %c0_i32_0 : i32, i32
  }
  func.func @transform_8(%arg0: i32) -> (i32, i32) {
    %c0_i32 = arith.constant 0 : i32
    %c0_i32_0 = arith.constant 0 : i32
    %c0_i32_1 = arith.constant 0 : i32
    return %c0_i32, %c0_i32_0 : i32, i32
  }
  func.func @transform_9(%arg0: i32) -> (i32, i32) {
    %c0_i32 = arith.constant 0 : i32
    %c0_i32_0 = arith.constant 0 : i32
    %c0_i32_1 = arith.constant 0 : i32
    return %c0_i32, %c0_i32_0 : i32, i32
  }
  func.func @transform_10(%arg0: i32) -> (i32, i32) {
    %c0_i32 = arith.constant 0 : i32
    %c0_i32_0 = arith.constant 0 : i32
    %c0_i32_1 = arith.constant 0 : i32
    return %c0_i32, %c0_i32_0 : i32, i32
  }
  func.func @transform_11(%arg0: i32) -> (i32, i32) {
    %c0_i32 = arith.constant 0 : i32
    %c0_i32_0 = arith.constant 0 : i32
    return %arg0, %c0_i32 : i32, i32
  }
}

</mosaic_0001>

<bundles_post_ra>
// kernel: disease_mlp_forward.1
= control target key start
LH: loop header
LB: loop body
LE: loop exit
PB: predicated region body
PF: predicated region fallthrough
CT: control target
= control target key end

     0   :  { %16 = vsyncpa [#allocation3], 0  ;;  %s1442_s0 = inlined_call_operand.vmem [shape: f32[16,32], index: 0, kind: input, shape index: {}]   ;;  %s1443_s1 = inlined_call_operand.hbm [shape: f32[32,128], index: 1, kind: input, shape index: {}]   ;;  %s1444_s2 = inlined_call_operand.hbm [shape: f32[1,128], index: 2, kind: input, shape index: {}]   ;;  %s1445_s3 = inlined_call_operand.vmem [shape: f32[128,128], index: 3, kind: input, shape index: {}]   ;;  %s1446_s4 = inlined_call_operand.hbm [shape: f32[1,128], index: 4, kind: input, shape index: {}]   ;;  %s1447_s5 = inlined_call_operand.hbm [shape: f32[256,128], index: 5, kind: input, shape index: {}]   ;;  %s1448_s6 = inlined_call_operand.hbm [shape: f32[1,128], index: 6, kind: input, shape index: {}]   ;;  %s1449_s7 = inlined_call_operand.hbm [shape: f32[384,128], index: 7, kind: input, shape index: {}]   ;;  %s1450_s8 = inlined_call_operand.hbm [shape: f32[1,128], index: 8, kind: input, shape index: {}]   ;;  %s1451_s9 = inlined_call_operand.vmem [shape: f32[128,8], index: 9, kind: input, shape index: {}]   ;;  %s1452_s10 = inlined_call_operand.hbm [shape: f32[1,8], index: 10, kind: input, shape index: {}]   ;;  %s1453_s11 = inlined_call_operand.vmem [shape: f32[16,8], index: 11, kind: output, shape index: {}]  }
   0x1   :  { %17 = vsyncpa [#allocation5], 0 }
   0x2   :  { %18 = vsyncpa [#allocation8], 0 }
   0x3   :  { %19 = vsyncpa [#allocation11], 0 }
   0x4   :  { %20 = vsyncpa [#allocation14], 0  ;;  %s1228_s17 = smov [#allocation4]  }
   0x5   :  { %s41_s18 = sshll.u32 %s1228_s17, 4  ;;  %s42_s18 = int_to_ptr.vmem [resolvable:$true] %s41_s18 }
   0x6   :  { %s1066_s19 = scalar_lea.vmem %s42_s18, 16  ;;  %s1070_s20 = scalar_lea.vmem %s42_s18, 32 }
   0x7   :  { %p1067_p0 = scmp.ne.s32.totalorder %s42_s18, %s1066_s19  ;;  %p1071_p1 = scmp.lt.s32.totalorder %s42_s18, %s42_s18 }
   0x8   :  { %p1072_p2 = scmp.lt.s32.totalorder %s1070_s20, %s1066_s19 }
   0xa   :  { %p1073_p3 = por %p1072_p2, %p1071_p1 }
   0xc   :  { %p1074_p4 = pnand %p1073_p3, %p1067_p0 }
   0xe   :  { %1077 = shalt.err (!%p1074_p4)
}
   0xf   :  { %44 = dma.hbm_to_vmem [thread:$0]  %s1444_s2, 16, %s42_s18, [#allocation5]  }
  0x10   :  { %s1229_s23 = smov [#allocation7]   ;;  %s1230_s25 = smov [#allocation10]  }
  0x11   :  { %s62_s24 = sshll.u32 %s1229_s23, 4  ;;  %s84_s26 = sshll.u32 %s1230_s25, 4  ;;  %s63_s24 = int_to_ptr.vmem [resolvable:$true] %s62_s24  ;;  %s85_s26 = int_to_ptr.vmem [resolvable:$true] %s84_s26 }
  0x12   :  { %s1086_s27 = scalar_lea.vmem %s63_s24, 4096  ;;  %p1091_p6 = scmp.lt.s32.totalorder %s63_s24, %s63_s24 }
  0x13   :  { %p1087_p5 = scmp.ne.s32.totalorder %s63_s24, %s1086_s27  ;;  %p1092_p7 = scmp.lt.s32.totalorder %s1086_s27, %s1086_s27 }
  0x15   :  { %p1093_p8 = por %p1092_p7, %p1091_p6 }
  0x17   :  { %p1094_p9 = pnand %p1093_p8, %p1087_p5 }
  0x19   :  { %1097 = shalt.err (!%p1094_p9)
}
  0x1a   :  { %s1231_s28 = smov 128   ;;  %s1232_s29 = smov 8  }
  0x1b   :  { %68 = dma.hbm_to_vmem [thread:$0]  %s1447_s5, 4096, %s63_s24, [#allocation8], %s1231_s28, %s1231_s28, %s1232_s29  }
  0x1c   :  { %s1106_s2 = scalar_lea.vmem %s85_s26, 6144  ;;  %p1111_p11 = scmp.lt.s32.totalorder %s85_s26, %s85_s26 }
  0x1d   :  { %p1107_p10 = scmp.ne.s32.totalorder %s85_s26, %s1106_s2  ;;  %p1112_p12 = scmp.lt.s32.totalorder %s1106_s2, %s1106_s2 }
  0x1f   :  { %p1113_p13 = por %p1112_p12, %p1111_p11 }
  0x21   :  { %p1114_p0 = pnand %p1113_p13, %p1107_p10 }
  0x23   :  { %1117 = shalt.err (!%p1114_p0)
}
  0x24   :  { %90 = dma.hbm_to_vmem [thread:$0]  %s1449_s7, 6144, %s85_s26, [#allocation11], %s1231_s28, %s1231_s28, %s1232_s29  }
  0x25   :  { %s1233_s15 = smov [#allocation2]   ;;  %s1234_s17 = smov [#allocation6]  }
  0x26   :  { %s28_s16 = sshll.u32 %s1233_s15, 4  ;;  %s53_s18 = sshll.u32 %s1234_s17, 4  ;;  %s29_s16 = int_to_ptr.vmem [resolvable:$true] %s28_s16  ;;  %s54_s18 = int_to_ptr.vmem [resolvable:$true] %s53_s18 }
  0x27   :  { %s1126_s19 = scalar_lea.vmem %s29_s16, 512  ;;  %p1131_p2 = scmp.lt.s32.totalorder %s29_s16, %s29_s16 }
  0x28   :  { %p1127_p1 = scmp.ne.s32.totalorder %s29_s16, %s1126_s19  ;;  %p1132_p3 = scmp.lt.s32.totalorder %s1126_s19, %s1126_s19 }
  0x2a   :  { %p1133_p4 = por %p1132_p3, %p1131_p2 }
  0x2c   :  { %p1134_p5 = pnand %p1133_p4, %p1127_p1 }
  0x2e   :  { %1137 = shalt.err (!%p1134_p5)
}
  0x2f   :  { %34 = dma.hbm_to_vmem [thread:$0]  %s1443_s1, 512, %s29_s16, [#allocation3], %s1231_s28, %s1231_s28, %s1232_s29  }
  0x30   :  { %s1146_s21 = scalar_lea.vmem %s54_s18, 16  ;;  %s1150_s7 = scalar_lea.vmem %s54_s18, 32 }
  0x31   :  { %p1147_p6 = scmp.ne.s32.totalorder %s54_s18, %s1146_s21  ;;  %p1151_p7 = scmp.lt.s32.totalorder %s54_s18, %s54_s18 }
  0x32   :  { %p1152_p8 = scmp.lt.s32.totalorder %s1150_s7, %s1146_s21 }
  0x34   :  { %p1153_p9 = por %p1152_p8, %p1151_p7 }
  0x36   :  { %p1154_p10 = pnand %p1153_p9, %p1147_p6 }
  0x38   :  { %1157 = shalt.err (!%p1154_p10)
}
  0x39   :  { %56 = dma.hbm_to_vmem [thread:$0]  %s1446_s4, 16, %s54_s18, [#allocation5]  }
  0x3a   :  { %s1235_s24 = smov [#allocation9]   ;;  %s1236_s26 = smov [#allocation12]  }
  0x3b   :  { %s75_s25 = sshll.u32 %s1235_s24, 4  ;;  %s97_s27 = sshll.u32 %s1236_s26, 4  ;;  %s76_s25 = int_to_ptr.vmem [resolvable:$true] %s75_s25  ;;  %s98_s27 = int_to_ptr.vmem [resolvable:$true] %s97_s27 }
  0x3c   :  { %s1166_s30 = scalar_lea.vmem %s76_s25, 16  ;;  %s1170_s1 = scalar_lea.vmem %s76_s25, 32 }
  0x3d   :  { %p1167_p11 = scmp.ne.s32.totalorder %s76_s25, %s1166_s30  ;;  %p1171_p12 = scmp.lt.s32.totalorder %s76_s25, %s76_s25 }
  0x3e   :  { %p1172_p13 = scmp.lt.s32.totalorder %s1170_s1, %s1166_s30 }
  0x40   :  { %p1173_p0 = por %p1172_p13, %p1171_p12 }
  0x42   :  { %p1174_p1 = pnand %p1173_p0, %p1167_p11 }
  0x44   :  { %1177 = shalt.err (!%p1174_p1)
}
  0x45   :  { %78 = dma.hbm_to_vmem [thread:$0]  %s1448_s6, 16, %s76_s25, [#allocation8]  }
  0x46   :  { %s1186_s12 = scalar_lea.vmem %s98_s27, 16  ;;  %s1190_s4 = scalar_lea.vmem %s98_s27, 32 }
  0x47   :  { %p1187_p2 = scmp.ne.s32.totalorder %s98_s27, %s1186_s12  ;;  %p1191_p3 = scmp.lt.s32.totalorder %s98_s27, %s98_s27 }
  0x48   :  { %p1192_p4 = scmp.lt.s32.totalorder %s1190_s4, %s1186_s12 }
  0x4a   :  { %p1193_p5 = por %p1192_p4, %p1191_p3 }
  0x4c   :  { %p1194_p6 = pnand %p1193_p5, %p1187_p2 }
  0x4e   :  { %1197 = shalt.err (!%p1194_p6)
}
  0x4f   :  { %100 = dma.hbm_to_vmem [thread:$0]  %s1450_s8, 16, %s98_s27, [#allocation11]  }
  0x50   :  { %s1237_s14 = smov [#allocation13]  }
  0x51   :  { %s109_s15 = sshll.u32 %s1237_s14, 4  ;;  %s110_s15 = int_to_ptr.vmem [resolvable:$true] %s109_s15 }
  0x52   :  { %s1206_s16 = scalar_lea.vmem %s110_s15, 16  ;;  %s1210_s17 = scalar_lea.vmem %s110_s15, 32 }
  0x53   :  { %p1207_p7 = scmp.ne.s32.totalorder %s110_s15, %s1206_s16  ;;  %p1211_p8 = scmp.lt.s32.totalorder %s110_s15, %s110_s15 }
  0x54   :  { %p1212_p9 = scmp.lt.s32.totalorder %s1210_s17, %s1206_s16 }
  0x56   :  { %p1213_p10 = por %p1212_p9, %p1211_p8 }
  0x58   :  { %p1214_p11 = pnand %p1213_p10, %p1207_p7 }
  0x5a   :  { %1217 = shalt.err (!%p1214_p11)
}
  0x5b   :  { %112 = dma.hbm_to_vmem [thread:$0]  %s1452_s10, 16, %s110_s15, [#allocation14]  }
  0x5c   :  { %1218 = dma.done.wait [#allocation3], 512  }
  0x5d   :  { %1219 = vsyncadd [#allocation3], 4294966784 }
  0x5e   :  { %1220 = dma.done.wait [#allocation5], 32  }
  0x5f   :  { %1221 = vsyncadd [#allocation5], 4294967264 }
  0x60   :  { %1222 = dma.done.wait [#allocation8], 4112  }
  0x61   :  { %1223 = vsyncadd [#allocation8], 4294963184 }
  0x62   :  { %1224 = dma.done.wait [#allocation11], 6160  }
  0x63   :  { %1225 = vsyncadd [#allocation11], 4294961136 }
  0x64   :  { %1226 = dma.done.wait [#allocation14], 16  }
  0x65   :  { %1227 = vsyncadd [#allocation14], 4294967280  ;;  %vm150_vm0 = vcmask 261120   ;;  %v142_v0 = vld [vmem:[#allocation2 + $0x18] sm:$0xff]  ;;  %v141_v1 = vld [vmem:[#allocation2 + $0x10] sm:$0xff]  ;;  %vm767_vm1 = vcmask 64512  }
  0x66   :  { %924 = vmatprep.subr.mxu0 %v142_v0  ;;  %v137_v2 = vld [vmem:[%s1442_s0] sm:$0xff]  ;;  %v140_v3 = vld [vmem:[#allocation2 + $0x8] sm:$0xff]  ;;  %v249_v4 = vld [vmem:[%s1445_s3 + $0x78] sm:$0xff] }
  0x67   :  { %925 = vmatpush3.msra.mxu0 %v142_v0  ;;  %932 = vmatprep.mubr.msk.f32.mxu0 %vm150_vm0, %v137_v2  ;;  %v248_v5 = vld [vmem:[%s1445_s3 + $0x70] sm:$0xff]  ;;  %v139_v6 = vld [vmem:[#allocation2] sm:$0xff]  ;;  %v247_v7 = vld [vmem:[%s1445_s3 + $0x68] sm:$0xff] }
  0x68   :  { %926 = vmatprep.subr.mxu0 %v141_v1  ;;  %935 = vmatprep.subr.mxu1 %v249_v4  ;;  %v138_v8 = vld [vmem:[%s1442_s0 + $0x8] sm:$0xff]  ;;  %v246_v9 = vld [vmem:[%s1445_s3 + $0x60] sm:$0xff]  ;;  %v245_v10 = vld [vmem:[%s1445_s3 + $0x58] sm:$0xff] }
  0x69   :  { %927 = vmatpush3.msra.mxu0 %v141_v1  ;;  %936 = vmatpush3.msra.mxu1 %v249_v4  ;;  %v244_v11 = vld [vmem:[%s1445_s3 + $0x50] sm:$0xff]  ;;  %v243_v12 = vld [vmem:[%s1445_s3 + $0x48] sm:$0xff]  ;;  %v242_v13 = vld [vmem:[%s1445_s3 + $0x40] sm:$0xff] }
  0x6a   :  { %928 = vmatprep.subr.mxu0 %v140_v3  ;;  %937 = vmatprep.subr.mxu1 %v248_v5  ;;  %v241_v14 = vld [vmem:[%s1445_s3 + $0x38] sm:$0xff]  ;;  %v240_v15 = vld [vmem:[%s1445_s3 + $0x30] sm:$0xff]  ;;  %v239_v16 = vld [vmem:[%s1445_s3 + $0x28] sm:$0xff] }
  0x6b   :  { %929 = vmatpush3.msra.mxu0 %v140_v3  ;;  %938 = vmatpush3.msra.mxu1 %v248_v5  ;;  %v238_v17 = vld [vmem:[%s1445_s3 + $0x20] sm:$0xff]  ;;  %v237_v18 = vld [vmem:[%s1445_s3 + $0x18] sm:$0xff]  ;;  %v236_v19 = vld [vmem:[%s1445_s3 + $0x10] sm:$0xff] }
  0x6c   :  { %930 = vmatprep.subr.mxu0 %v139_v6  ;;  %939 = vmatprep.subr.mxu1 %v247_v7  ;;  %v235_v20 = vld [vmem:[%s1445_s3 + $0x8] sm:$0xff]  ;;  %v234_v21 = vld [vmem:[%s1445_s3] sm:$0xff]  ;;  %v364_v25 = vld [vmem:[#allocation7 + $0xf0] sm:$0xff] }
  0x6d   :  { %931 = vmatpush3.msra.mxu0 %v139_v6  ;;  %940 = vmatpush3.msra.mxu1 %v247_v7  ;;  %v365_v22 = vld [vmem:[#allocation7 + $0xf8] sm:$0xff]  ;;  %v348_v26 = vld [vmem:[#allocation7 + $0x70] sm:$0xff]  ;;  %v363_v27 = vld [vmem:[#allocation7 + $0xe8] sm:$0xff] }
  0x6e   :  { %933 = vmatmul.mubr.msk.f32.vlgmr.msra.gmra.mxu0 %vm150_vm0, %v138_v8  ;;  %941 = vmatprep.subr.mxu1 %v246_v9  ;;  %v481_v23 = vld [vmem:[#allocation10 + $0xf8] sm:$0xff]  ;;  %v347_v28 = vld [vmem:[#allocation7 + $0x68] sm:$0xff]  ;;  %v360_v33 = vld [vmem:[#allocation7 + $0xd0] sm:$0xff] }
  0x6f   :  { %942 = vmatpush3.msra.mxu1 %v246_v9  ;;  %v349_v24 = vld [vmem:[#allocation7 + $0x78] sm:$0xff]  ;;  %812 = vmatprep.subr.mxu0 %v365_v22  ;;  %v362_v29 = vld [vmem:[#allocation7 + $0xe0] sm:$0xff]  ;;  %v344_v34 = vld [vmem:[#allocation7 + $0x50] sm:$0xff] }
  0x70   :  { %943 = vmatprep.subr.mxu1 %v245_v10  ;;  %813 = vmatpush3.msra.mxu0 %v349_v24  ;;  %v346_v30 = vld [vmem:[#allocation7 + $0x60] sm:$0xff]  ;;  %v361_v31 = vld [vmem:[#allocation7 + $0xd8] sm:$0xff]  ;;  %v359_v35 = vld [vmem:[#allocation7 + $0xc8] sm:$0xff] }
  0x71   :  { %944 = vmatpush3.msra.mxu1 %v245_v10  ;;  %814 = vmatprep.subr.mxu0 %v364_v25  ;;  %v345_v32 = vld [vmem:[#allocation7 + $0x58] sm:$0xff]  ;;  %v343_v36 = vld [vmem:[#allocation7 + $0x48] sm:$0xff]  ;;  %v358_v37 = vld [vmem:[#allocation7 + $0xc0] sm:$0xff] }
  0x72   :  { %945 = vmatprep.subr.mxu1 %v244_v11  ;;  %815 = vmatpush3.msra.mxu0 %v348_v26  ;;  %v342_v38 = vld [vmem:[#allocation7 + $0x40] sm:$0xff]  ;;  %v357_v39 = vld [vmem:[#allocation7 + $0xb8] sm:$0xff]  ;;  %v356_v41 = vld [vmem:[#allocation7 + $0xb0] sm:$0xff] }
  0x73   :  { %946 = vmatpush3.msra.mxu1 %v244_v11  ;;  %816 = vmatprep.subr.mxu0 %v363_v27  ;;  %v341_v40 = vld [vmem:[#allocation7 + $0x38] sm:$0xff]  ;;  %v340_v42 = vld [vmem:[#allocation7 + $0x30] sm:$0xff]  ;;  %v355_v43 = vld [vmem:[#allocation7 + $0xa8] sm:$0xff] }
  0x74   :  { %947 = vmatprep.subr.mxu1 %v243_v12  ;;  %817 = vmatpush3.msra.mxu0 %v347_v28  ;;  %v339_v44 = vld [vmem:[#allocation7 + $0x28] sm:$0xff]  ;;  %v354_v45 = vld [vmem:[#allocation7 + $0xa0] sm:$0xff]  ;;  %v779_v47 = vld [vmem:[#allocation4] ss:$0 sm:$0xff] }
  0x75   :  { %948 = vmatpush3.msra.mxu1 %v243_v12  ;;  %818 = vmatprep.subr.mxu0 %v362_v29  ;;  %v338_v46 = vld [vmem:[#allocation7 + $0x20] sm:$0xff]  ;;  %v480_v55 = vld [vmem:[#allocation10 + $0xf0] sm:$0xff]  ;;  %v479_v57 = vld [vmem:[#allocation10 + $0xe8] sm:$0xff] }
  0x76   :  { %949 = vmatprep.subr.mxu1 %v242_v13  ;;  %819 = vmatpush3.msra.mxu0 %v346_v30  ;;  %v465_v54 = vld [vmem:[#allocation10 + $0x78] sm:$0xff]  ;;  %v464_v56 = vld [vmem:[#allocation10 + $0x70] sm:$0xff]  ;;  %v463_v58 = vld [vmem:[#allocation10 + $0x68] sm:$0xff] }
  0x77   :  { %950 = vmatpush3.msra.mxu1 %v242_v13  ;;  %820 = vmatprep.subr.mxu0 %v361_v31  ;;  %v478_v59 = vld [vmem:[#allocation10 + $0xe0] sm:$0xff]  ;;  %v477_v61 = vld [vmem:[#allocation10 + $0xd8] sm:$0xff]  ;;  %v476_v63 = vld [vmem:[#allocation10 + $0xd0] sm:$0xff] }
  0x78   :  { %951 = vmatprep.subr.mxu1 %v241_v14  ;;  %821 = vmatpush3.msra.mxu0 %v345_v32  ;;  %v462_v60 = vld [vmem:[#allocation10 + $0x60] sm:$0xff]  ;;  %v461_v62 = vld [vmem:[#allocation10 + $0x58] sm:$0xff]  ;;  %v460_v0 = vld [vmem:[#allocation10 + $0x50] sm:$0xff] }
  0x79   :  { %952 = vmatpush3.msra.mxu1 %v241_v14  ;;  %822 = vmatprep.subr.mxu0 %v360_v33  ;;  %v475_v1 = vld [vmem:[#allocation10 + $0xc8] sm:$0xff]  ;;  %v474_v3 = vld [vmem:[#allocation10 + $0xc0] sm:$0xff]  ;;  %v473_v5 = vld [vmem:[#allocation10 + $0xb8] sm:$0xff] }
  0x7a   :  { %953 = vmatprep.subr.mxu1 %v240_v15  ;;  %823 = vmatpush3.msra.mxu0 %v344_v34  ;;  %v459_v2 = vld [vmem:[#allocation10 + $0x48] sm:$0xff]  ;;  %v458_v4 = vld [vmem:[#allocation10 + $0x40] sm:$0xff]  ;;  %v457_v6 = vld [vmem:[#allocation10 + $0x38] sm:$0xff] }
  0x7b   :  { %954 = vmatpush3.msra.mxu1 %v240_v15  ;;  %824 = vmatprep.subr.mxu0 %v359_v35  ;;  %v472_v7 = vld [vmem:[#allocation10 + $0xb0] sm:$0xff]  ;;  %v471_v9 = vld [vmem:[#allocation10 + $0xa8] sm:$0xff]  ;;  %v470_v11 = vld [vmem:[#allocation10 + $0xa0] sm:$0xff] }
  0x7c   :  { %955 = vmatprep.subr.mxu1 %v239_v16  ;;  %825 = vmatpush3.msra.mxu0 %v343_v36  ;;  %v456_v8 = vld [vmem:[#allocation10 + $0x30] sm:$0xff]  ;;  %v455_v10 = vld [vmem:[#allocation10 + $0x28] sm:$0xff]  ;;  %v454_v12 = vld [vmem:[#allocation10 + $0x20] sm:$0xff] }
  0x7d   :  { %956 = vmatpush3.msra.mxu1 %v239_v16  ;;  %826 = vmatprep.subr.mxu0 %v358_v37  ;;  %v353_v13 = vld [vmem:[#allocation7 + $0x98] sm:$0xff]  ;;  %v467_v22 = vld [vmem:[#allocation10 + $0x88] sm:$0xff]  ;;  %v350_v25 = vld [vmem:[#allocation7 + $0x80] sm:$0xff] }
  0x7e   :  { %957 = vmatprep.subr.mxu1 %v238_v17  ;;  %827 = vmatpush3.msra.mxu0 %v342_v38  ;;  %v469_v14 = vld [vmem:[#allocation10 + $0x98] sm:$0xff]  ;;  %v451_v24 = vld [vmem:[#allocation10 + $0x8] sm:$0xff]  ;;  %v466_v26 = vld [vmem:[#allocation10 + $0x80] sm:$0xff] }
  0x7f   :  { %958 = vmatpush3.msra.mxu1 %v238_v17  ;;  %828 = vmatprep.subr.mxu0 %v357_v39  ;;  %v337_v15 = vld [vmem:[#allocation7 + $0x18] sm:$0xff]  ;;  %v352_v17 = vld [vmem:[#allocation7 + $0x90] sm:$0xff]  ;;  %v334_v27 = vld [vmem:[#allocation7] sm:$0xff] }
  0x80   :  { %959 = vmatprep.subr.mxu1 %v237_v18  ;;  %829 = vmatpush3.msra.mxu0 %v341_v40  ;;  %v453_v16 = vld [vmem:[#allocation10 + $0x18] sm:$0xff]  ;;  %v450_v28 = vld [vmem:[#allocation10] sm:$0xff]  ;;  %v496_v37 = vld [vmem:[#allocation10 + $0x170] sm:$0xff] }
  0x81   :  { %960 = vmatpush3.msra.mxu1 %v237_v18  ;;  %830 = vmatprep.subr.mxu0 %v356_v41  ;;  %v468_v18 = vld [vmem:[#allocation10 + $0x90] sm:$0xff]  ;;  %v497_v29 = vld [vmem:[#allocation10 + $0x178] sm:$0xff]  ;;  %v495_v38 = vld [vmem:[#allocation10 + $0x168] sm:$0xff] }
  0x82   :  { %961 = vmatprep.subr.mxu1 %v236_v19  ;;  %831 = vmatpush3.msra.mxu0 %v340_v42  ;;  %v782_v31 = vld [vmem:[#allocation6] ss:$0 sm:$0xff]  ;;  %v494_v39 = vld [vmem:[#allocation10 + $0x160] sm:$0xff]  ;;  %v492_v41 = vld [vmem:[#allocation10 + $0x150] sm:$0xff] }
  0x83   :  { %962 = vmatpush3.msra.mxu1 %v236_v19  ;;  %832 = vmatprep.subr.mxu0 %v355_v43  ;;  %v336_v19 = vld [vmem:[#allocation7 + $0x10] sm:$0xff]  ;;  %v493_v40 = vld [vmem:[#allocation10 + $0x158] sm:$0xff]  ;;  %v490_v43 = vld [vmem:[#allocation10 + $0x140] sm:$0xff] }
  0x84   :  { %963 = vmatprep.subr.mxu1 %v235_v20  ;;  %833 = vmatpush3.msra.mxu0 %v339_v44  ;;  %v491_v42 = vld [vmem:[#allocation10 + $0x148] sm:$0xff]  ;;  %v489_v44 = vld [vmem:[#allocation10 + $0x138] sm:$0xff] }
  0x85   :  { %964 = vmatpush3.msra.mxu1 %v235_v20  ;;  %834 = vmatprep.subr.mxu0 %v354_v45  ;;  %v452_v20 = vld [vmem:[#allocation10 + $0x10] sm:$0xff] }
  0x86   :  { %965 = vmatprep.subr.mxu1 %v234_v21  ;;  %835 = vmatpush3.msra.mxu0 %v338_v46  ;;  %v488_v45 = vld [vmem:[#allocation10 + $0x130] sm:$0xff]  ;;  %v487_v46 = vld [vmem:[#allocation10 + $0x128] sm:$0xff] }
  0x87   :  { %966 = vmatpush3.msra.mxu1 %v234_v21  ;;  %836 = vmatprep.subr.mxu0 %v353_v13  ;;  %v351_v21 = vld [vmem:[#allocation7 + $0x88] sm:$0xff] }
  0x88   :  { %850 = vmatprep.subr.mxu1 %v481_v23  ;;  %837 = vmatpush3.msra.mxu0 %v337_v15  ;;  %v335_v23 = vld [vmem:[#allocation7 + $0x8] sm:$0xff] }
  0x89   :  { %838 = vmatprep.subr.mxu0 %v352_v17  ;;  %v658_v13 = vld [vmem:[%s1451_s9 + $0x8] sm:$0xff] }
  0x8a   :  { %839 = vmatpush3.msra.mxu0 %v336_v19 }
  0x8b   :  { %840 = vmatprep.subr.mxu0 %v351_v21  ;;  %v784_v21 = vld [vmem:[#allocation12] ss:$0 sm:$0xff] }
  0x8c   :  { %841 = vmatpush3.msra.mxu0 %v335_v23 }
  0x8d   :  { %842 = vmatprep.subr.mxu0 %v350_v25 }
  0x8e   :  { %843 = vmatpush3.msra.mxu0 %v334_v27 }
  0x8f   :  { %970 = vmatprep.subr.mxu0 %v497_v29 }
 0x12e   :  { %v934_v48 = vpop.f32.mrf.mxu0 }
 0x12f   :  { %v229_v49 = vadd.f32 %v934_v48, %v779_v47  ;;  %v485_v48 = vld [vmem:[#allocation10 + $0x118] sm:$0xff] }
 0x130   :  { %v223_v50 = vpop.f32.mrf.mxu0 }
 0x131   :  { %v224_v51 = vadd.f32 %v779_v47, %v223_v50  ;;  %v1380_v53 = vmax.f32 %v229_v49, 0.0  ;;  %v486_v47 = vld [vmem:[#allocation10 + $0x120] sm:$0xff]  ;;  %v484_v49 = vld [vmem:[#allocation10 + $0x110] sm:$0xff]  ;;  %v483_v50 = vld [vmem:[#allocation10 + $0x108] sm:$0xff] }
 0x133   :  { %v1378_v52 = vmax.f32 %v224_v51, 0.0  ;;  %v482_v51 = vld [vmem:[#allocation10 + $0x100] sm:$0xff] }
 0x135   :  { %967 = vmatprep.mubr.f32.mxu1 %v1378_v52 }
 0x136   :  { %968 = vmatmul.mubr.f32.vlgmr.msra.gmra.mxu1 %v1380_v53 }
 0x137   :  { %851 = vmatpush3.msra.mxu1 %v465_v54  ;;  %v670_v54 = vld [vmem:[%s1451_s9 + $0x68] sm:$0xff] }
 0x138   :  { %852 = vmatprep.subr.mxu1 %v480_v55  ;;  %v669_v55 = vld [vmem:[%s1451_s9 + $0x60] sm:$0xff] }
 0x139   :  { %853 = vmatpush3.msra.mxu1 %v464_v56  ;;  %v668_v56 = vld [vmem:[%s1451_s9 + $0x58] sm:$0xff] }
 0x13a   :  { %854 = vmatprep.subr.mxu1 %v479_v57  ;;  %v667_v57 = vld [vmem:[%s1451_s9 + $0x50] sm:$0xff] }
 0x13b   :  { %855 = vmatpush3.msra.mxu1 %v463_v58  ;;  %v666_v58 = vld [vmem:[%s1451_s9 + $0x48] sm:$0xff] }
 0x13c   :  { %856 = vmatprep.subr.mxu1 %v478_v59  ;;  %v665_v59 = vld [vmem:[%s1451_s9 + $0x40] sm:$0xff] }
 0x13d   :  { %857 = vmatpush3.msra.mxu1 %v462_v60  ;;  %v664_v60 = vld [vmem:[%s1451_s9 + $0x38] sm:$0xff] }
 0x13e   :  { %858 = vmatprep.subr.mxu1 %v477_v61  ;;  %v663_v61 = vld [vmem:[%s1451_s9 + $0x30] sm:$0xff] }
 0x13f   :  { %859 = vmatpush3.msra.mxu1 %v461_v62  ;;  %v662_v62 = vld [vmem:[%s1451_s9 + $0x28] sm:$0xff] }
 0x140   :  { %860 = vmatprep.subr.mxu1 %v476_v63  ;;  %v661_v63 = vld [vmem:[%s1451_s9 + $0x20] sm:$0xff] }
 0x141   :  { %861 = vmatpush3.msra.mxu1 %v460_v0 }
 0x142   :  { %862 = vmatprep.subr.mxu1 %v475_v1  ;;  %v783_v1 = vld [vmem:[#allocation9] ss:$0 sm:$0xff] }
 0x143   :  { %863 = vmatpush3.msra.mxu1 %v459_v2 }
 0x144   :  { %864 = vmatprep.subr.mxu1 %v474_v3 }
 0x145   :  { %865 = vmatpush3.msra.mxu1 %v458_v4 }
 0x146   :  { %866 = vmatprep.subr.mxu1 %v473_v5 }
 0x147   :  { %867 = vmatpush3.msra.mxu1 %v457_v6 }
 0x148   :  { %868 = vmatprep.subr.mxu1 %v472_v7 }
 0x149   :  { %869 = vmatpush3.msra.mxu1 %v456_v8 }
 0x14a   :  { %870 = vmatprep.subr.mxu1 %v471_v9 }
 0x14b   :  { %871 = vmatpush3.msra.mxu1 %v455_v10 }
 0x14c   :  { %872 = vmatprep.subr.mxu1 %v470_v11  ;;  %v660_v11 = vld [vmem:[%s1451_s9 + $0x18] sm:$0xff] }
 0x14d   :  { %873 = vmatpush3.msra.mxu1 %v454_v12  ;;  %v659_v12 = vld [vmem:[%s1451_s9 + $0x10] sm:$0xff] }
 0x14e   :  { %874 = vmatprep.subr.mxu1 %v469_v14  ;;  %v657_v14 = vld [vmem:[%s1451_s9] sm:$0xff] }
 0x14f   :  { %875 = vmatpush3.msra.mxu1 %v453_v16 }
 0x150   :  { %876 = vmatprep.subr.mxu1 %v468_v18 }
 0x151   :  { %877 = vmatpush3.msra.mxu1 %v452_v20 }
 0x152   :  { %878 = vmatprep.subr.mxu1 %v467_v22 }
 0x153   :  { %879 = vmatpush3.msra.mxu1 %v451_v24 }
 0x154   :  { %880 = vmatprep.subr.mxu1 %v466_v26 }
 0x155   :  { %881 = vmatpush3.msra.mxu1 %v450_v28 }
 0x1f6   :  { %v969_v30 = vpop.f32.mrf.mxu1 }
 0x1f7   :  { %v329_v33 = vadd.f32 %v969_v30, %v782_v31  ;;  %v785_v30 = vld [vmem:[#allocation13] ss:$0 sm:$0xff] }
 0x1f8   :  { %v323_v32 = vpop.f32.mrf.mxu1 }
 0x1f9   :  { %v324_v34 = vadd.f32 %v782_v31, %v323_v32  ;;  %v333_v36 = vmax.f32 %v329_v33, 0.0 }
 0x1fb   :  { %v332_v35 = vmax.f32 %v324_v34, 0.0 }
 0x1fd   :  { %437 = vmatprep.mubr.f32.mxu0 %v332_v35  ;;  %569 = vmatprep.mubr.f32.mxu1 %v332_v35 }
 0x1fe   :  { %438 = vmatmul.mubr.f32.vlgmr.msra.gmra.mxu0 %v1378_v52  ;;  %570 = vmatmul.mubr.f32.vlgmr.msra.gmra.mxu1 %v1378_v52  ;;  %v672_v52 = vld [vmem:[%s1451_s9 + $0x78] sm:$0xff] }
 0x1ff   :  { %442 = vmatprep.mubr.f32.mxu0 %v333_v36  ;;  %574 = vmatprep.mubr.f32.mxu1 %v333_v36 }
 0x200   :  { %971 = vmatpush3.msra.mxu0 %v497_v29  ;;  %1005 = vmatprep.subr.mxu1 %v672_v52 }
 0x201   :  { %972 = vmatprep.subr.mxu0 %v496_v37  ;;  %1006 = vmatpush3.msra.mxu1 %v672_v52 }
 0x202   :  { %443 = vmatmul.mubr.f32.gmra.mxu0 %v1380_v53  ;;  %575 = vmatmul.mubr.f32.gmra.mxu1 %v1380_v53  ;;  %v671_v53 = vld [vmem:[%s1451_s9 + $0x70] sm:$0xff] }
 0x203   :  { %973 = vmatpush3.msra.mxu0 %v496_v37  ;;  %1007 = vmatprep.subr.mxu1 %v671_v53 }
 0x204   :  { %974 = vmatprep.subr.mxu0 %v495_v38  ;;  %1008 = vmatpush3.msra.mxu1 %v671_v53 }
 0x205   :  { %975 = vmatpush3.msra.mxu0 %v495_v38  ;;  %1009 = vmatprep.subr.mxu1 %v670_v54 }
 0x206   :  { %976 = vmatprep.subr.mxu0 %v494_v39  ;;  %1010 = vmatpush3.msra.mxu1 %v670_v54 }
 0x207   :  { %977 = vmatpush3.msra.mxu0 %v494_v39  ;;  %1011 = vmatprep.subr.mxu1 %v669_v55 }
 0x208   :  { %978 = vmatprep.subr.mxu0 %v493_v40  ;;  %1012 = vmatpush3.msra.mxu1 %v669_v55 }
 0x209   :  { %979 = vmatpush3.msra.mxu0 %v493_v40  ;;  %1013 = vmatprep.subr.mxu1 %v668_v56 }
 0x20a   :  { %980 = vmatprep.subr.mxu0 %v492_v41  ;;  %1014 = vmatpush3.msra.mxu1 %v668_v56 }
 0x20b   :  { %981 = vmatpush3.msra.mxu0 %v492_v41  ;;  %1015 = vmatprep.subr.mxu1 %v667_v57 }
 0x20c   :  { %982 = vmatprep.subr.mxu0 %v491_v42  ;;  %1016 = vmatpush3.msra.mxu1 %v667_v57 }
 0x20d   :  { %983 = vmatpush3.msra.mxu0 %v491_v42  ;;  %1017 = vmatprep.subr.mxu1 %v666_v58 }
 0x20e   :  { %984 = vmatprep.subr.mxu0 %v490_v43  ;;  %1018 = vmatpush3.msra.mxu1 %v666_v58 }
 0x20f   :  { %985 = vmatpush3.msra.mxu0 %v490_v43  ;;  %1019 = vmatprep.subr.mxu1 %v665_v59 }
 0x210   :  { %986 = vmatprep.subr.mxu0 %v489_v44  ;;  %1020 = vmatpush3.msra.mxu1 %v665_v59 }
 0x211   :  { %987 = vmatpush3.msra.mxu0 %v489_v44  ;;  %1021 = vmatprep.subr.mxu1 %v664_v60 }
 0x212   :  { %988 = vmatprep.subr.mxu0 %v488_v45  ;;  %1022 = vmatpush3.msra.mxu1 %v664_v60 }
 0x213   :  { %989 = vmatpush3.msra.mxu0 %v488_v45  ;;  %1023 = vmatprep.subr.mxu1 %v663_v61 }
 0x214   :  { %990 = vmatprep.subr.mxu0 %v487_v46  ;;  %1024 = vmatpush3.msra.mxu1 %v663_v61 }
 0x215   :  { %991 = vmatpush3.msra.mxu0 %v487_v46  ;;  %1025 = vmatprep.subr.mxu1 %v662_v62 }
 0x216   :  { %992 = vmatprep.subr.mxu0 %v486_v47  ;;  %1026 = vmatpush3.msra.mxu1 %v662_v62 }
 0x217   :  { %993 = vmatpush3.msra.mxu0 %v486_v47  ;;  %1027 = vmatprep.subr.mxu1 %v661_v63 }
 0x218   :  { %994 = vmatprep.subr.mxu0 %v485_v48  ;;  %1028 = vmatpush3.msra.mxu1 %v661_v63 }
 0x219   :  { %995 = vmatpush3.msra.mxu0 %v485_v48  ;;  %1029 = vmatprep.subr.mxu1 %v660_v11 }
 0x21a   :  { %996 = vmatprep.subr.mxu0 %v484_v49  ;;  %1030 = vmatpush3.msra.mxu1 %v660_v11 }
 0x21b   :  { %997 = vmatpush3.msra.mxu0 %v484_v49  ;;  %1031 = vmatprep.subr.mxu1 %v659_v12 }
 0x21c   :  { %998 = vmatprep.subr.mxu0 %v483_v50  ;;  %1032 = vmatpush3.msra.mxu1 %v659_v12 }
 0x21d   :  { %999 = vmatpush3.msra.mxu0 %v483_v50  ;;  %1033 = vmatprep.subr.mxu1 %v658_v13 }
 0x21e   :  { %1000 = vmatprep.subr.mxu0 %v482_v51  ;;  %1034 = vmatpush3.msra.mxu1 %v658_v13 }
 0x21f   :  { %1001 = vmatpush3.msra.mxu0 %v482_v51  ;;  %1035 = vmatprep.subr.mxu1 %v657_v14 }
 0x220   :  { %1036 = vmatpush3.msra.mxu1 %v657_v14 }
 0x2be   :  { %v844_v0 = vpop.f32.mrf.mxu0  ;;  %v882_v15 = vpop.f32.mrf.mxu1 }
 0x2c0   :  { %v845_v2 = vpop.f32.mrf.mxu0  ;;  %v883_v16 = vpop.f32.mrf.mxu1 }
 0x2c1   :  { %v846_v3 = vadd.f32 %v845_v2, %v844_v0  ;;  %v884_v20 = vadd.f32 %v883_v16, %v882_v15 }
 0x2c2   :  { %v847_v4 = vpop.f32.mrf.mxu0  ;;  %v885_v17 = vpop.f32.mrf.mxu1 }
 0x2c3   :  { %v440_v5 = vadd.f32 %v846_v3, %v783_v1  ;;  %v572_v24 = vadd.f32 %v884_v20, %v784_v21 }
 0x2c4   :  { %v848_v6 = vpop.f32.mrf.mxu0  ;;  %v886_v18 = vpop.f32.mrf.mxu1 }
 0x2c5   :  { %v448_v7 = vmax.f32 %v440_v5, 0.0  ;;  %v849_v8 = vadd.f32 %v848_v6, %v847_v4  ;;  %v887_v19 = vadd.f32 %v886_v18, %v885_v17 }
 0x2c7   :  { %v445_v9 = vadd.f32 %v849_v8, %v783_v1  ;;  %1002 = vmatprep.mubr.f32.mxu0 %v448_v7  ;;  %v577_v22 = vadd.f32 %v887_v19, %v784_v21 }
 0x2c9   :  { %v449_v10 = vmax.f32 %v445_v9, 0.0 }
 0x2cb   :  { %1003 = vmatmul.mubr.f32.vlgmr.msra.gmra.mxu0 %v449_v10 }
 0x38b   :  { %v1004_v23 = vpop.f32.mrf.mxu0 }
 0x38c   :  { %v652_v25 = vadd.f32 %v1004_v23, %v577_v22 }
 0x38d   :  { %v646_v26 = vpop.f32.mrf.mxu0 }
 0x38e   :  { %v647_v27 = vadd.f32 %v646_v26, %v572_v24  ;;  %v656_v29 = vmax.f32 %v652_v25, 0.0 }
 0x390   :  { %v655_v28 = vmax.f32 %v647_v27, 0.0 }
 0x392   :  { %1037 = vmatprep.mubr.f32.mxu1 %v655_v28 }
 0x393   :  { %1038 = vmatmul.mubr.f32.vlgmr.msra.gmra.mxu1 %v656_v29 }
 0x453   :  { %v1039_v31 = vpop.f32.mrf.mxu1 }
 0x454   :  { %v752_v32 = vadd.f32 %v1039_v31, %v785_v30 }
 0x455   :  { %v746_v33 = vpop.f32.mrf.mxu1 }
 0x456   :  { %v787_v34 = vmul.f32 -1.442695, %v752_v32  ;;  %v747_v35 = vadd.f32 %v785_v30, %v746_v33 }
 0x458   :  { %1050 = vpow2.f32 %v787_v34  ;;  %v786_v36 = vmul.f32 -1.442695, %v747_v35 }
 0x45a   :  { %1052 = vpow2.f32 %v786_v36 }
 0x465   :  { %v1051_v37 = vpop.eup %1050 }
 0x466   :  { %v762_v38 = vadd.f32 1.0, %v1051_v37 }
 0x467   :  { %v1053_v39 = vpop.eup %1052 }
 0x468   :  { %1054 = vrcp.f32 %v762_v38  ;;  %v761_v40 = vadd.f32 1.0, %v1053_v39 }
 0x46a   :  { %1056 = vrcp.f32 %v761_v40 }
 0x475   :  { %v1055_v41 = vpop.eup %1054 }
 0x476   :  { %769 = vst.msk [vmem:[%s1453_s11 + $0x8] sm:$0xff] %vm767_vm1, %v1055_v41 }
 0x477   :  { %v1057_v42 = vpop.eup %1056 }
 0x478   :  { %768 = vst.msk [vmem:[%s1453_s11] sm:$0xff] %vm767_vm1, %v1057_v42 }
 0x479   :  { %774 = vsyncpa [#allocation3], 1 }
 0x47a   :  { %775 = vsyncpa [#allocation5], 1 }
 0x47b   :  { %776 = vsyncpa [#allocation8], 1 }
 0x47c   :  { %777 = vsyncpa [#allocation11], 1 }
 0x47d   :  { %778 = vsyncpa [#allocation14], 1 }

</bundles_post_ra>
